<compile_context>
chip_gen: v7x
topology: tpu7x:2x2x1
jax: 0.10.0
libtpu: 0.0.40
codegen_flags: <defaults>
</compile_context>

<pallas_src>
import functools

import numpy as np
import jax
import jax.numpy as jnp
from jax import lax
from jax.experimental import pallas as pl
from jax.experimental.pallas import tpu as pltpu


def _round_up(v, m):
    return ((v + m - 1) // m) * m


def _output_projection_kernel(x_ref, w_ref, b_ref, o_ref, xpad_ref,
                              *, C, H, W, LPAD):
    # x_ref   : (bt, C*H*W)  lane-dense input block (VMEM)
    # w_ref   : (C*9,)       flipped conv-transpose taps (SMEM scalars)
    # b_ref   : (1,)         bias (SMEM scalar)
    # o_ref   : (bt, W*H)    output block, already in w-major order
    # xpad_ref: (C, bt, LPAD + H*W + RPAD) zero-guarded per-channel scratch
    bt = x_ref.shape[0]
    HW = H * W
    PADHW = xpad_ref.shape[-1]
    f32 = jnp.float32

    # Zero the guards (the "row -1" / "row H" regions read by the ky=0 / ky=2
    # taps).  Dense lane-aligned stores, redone every step because scratch is
    # per-core and not zero-initialised under "parallel" sharding.
    xpad_ref[:, :, :LPAD] = jnp.zeros((C, bt, LPAD), f32)
    xpad_ref[:, :, LPAD + HW:] = jnp.zeros((C, bt, PADHW - LPAD - HW), f32)

    # Copy each channel contiguously into its guarded row (lane-aligned dense
    # store at offset LPAD; no offset-(1,1) halo relayout).
    for ci in range(C):
        xpad_ref[ci, :, LPAD:LPAD + HW] = (
            x_ref[:, ci * HW:(ci + 1) * HW].astype(f32))

    # 3x3 correlation with the flipped kernel as 9 flat-offset windows per
    # channel, grouped by kx so the column-wrap masking happens only twice,
    # after the C reduction.  Bias seeds the centre accumulator.
    accs = [jnp.zeros((bt, HW), f32),               # kx = 0 (reads col-1)
            jnp.full((bt, HW), b_ref[0], f32),      # kx = 1
            jnp.zeros((bt, HW), f32)]               # kx = 2 (reads col+1)
    for ci in range(C):
        for ky in range(3):
            for kx in range(3):
                off = LPAD + (ky - 1) * W + (kx - 1)
                win = xpad_ref[ci, :, off:off + HW]            # (bt, HW)
                accs[kx] = accs[kx] + win * w_ref[ci * 9 + ky * 3 + kx]

    # Column-wrap masks: in the flat layout the kx=0 (kx=2) taps of output
    # column 0 (W-1) read the neighbouring row's data -> zero them here.
    col = lax.broadcasted_iota(jnp.int32, (1, HW), 1) % W
    mask_l = (col != 0).astype(f32)
    mask_r = (col != W - 1).astype(f32)
    y = accs[1] + accs[0] * mask_l + accs[2] * mask_r          # (bt, HW) h-major

    # Fold torch.transpose(3,1) into the store: one dense (bt, W*H) write in
    # w-major order (the wrapper's reshape to (N, W, H, 1) is then free).
    yt = jnp.swapaxes(y.reshape(bt, H, W), 1, 2)               # (bt, W, H)
    o_ref[...] = yt.reshape(bt, W * H).astype(o_ref.dtype)


def _pick_bt(n, c, hw, padhw, budget_bytes=24 << 20):
    """Batch rows per grid step, sized from (8,128) tile-padded VMEM bytes."""
    def tile_padded_need(bt):
        bt8 = _round_up(bt, 8)
        return 4 * (2 * bt8 * _round_up(c * hw, 128)      # double-buffered in
                    + 2 * bt8 * _round_up(hw, 128)        # double-buffered out
                    + c * bt8 * _round_up(padhw, 128))    # guarded scratch
    if n <= 8:
        return n                      # one small block (block dim == array dim)
    bt = max(8, (min((n + 1) // 2, 256) // 8) * 8)        # >=2 steps (v7x 2 TCs)
    while bt > 8 and tile_padded_need(bt) > budget_bytes:
        bt -= 8
    return bt


def output_projection_layer(x, weight, bias):
    """ConvTranspose2d(C, 1, (3,3), padding=1) + transpose(3,1).

    x:      (N, C, H, W) float32
    weight: (C, 1, 3, 3) float32 (PyTorch ConvTranspose2d weight layout)
    bias:   (1,) float32
    returns (N, W, H, 1) float32
    """
    n, c, h, w = x.shape
    hw = h * w

    # conv_transpose(stride=1, pad=1, k=3) == correlation with the spatially
    # flipped kernel at padding=1; taps flattened for SMEM scalar reads.
    wf = weight[:, 0, ::-1, ::-1].reshape(c * 9).astype(jnp.float32)
    b = bias.reshape((1,)).astype(jnp.float32)

    # Layout plumbing: present the input as one lane-dense (N, C*H*W) slab so
    # the MAC loop runs at full 128-lane width and the block DMA is unpadded.
    x2 = x.reshape(n, c * hw)

    lpad = _round_up(w + 1, 128)          # left guard (keeps x copy lane-aligned)
    rpad = lpad                           # right guard
    padhw = lpad + hw + rpad

    # TODO(synk): no spatial (H/W) tiling fallback if a single batch row ever
    # exceeds the VMEM budget; fine for this module's sizes.
    bt = _pick_bt(n, c, hw, padhw)
    grid = (pl.cdiv(n, bt),)

    bt8 = _round_up(bt, 8)
    need = 4 * (2 * bt8 * _round_up(c * hw, 128)
                + 2 * bt8 * _round_up(hw, 128)
                + c * bt8 * _round_up(padhw, 128))
    # Tile-padded footprint + headroom, capped so it also fits v7x (64 MiB
    # physical VMEM); v5e/v6e have 128 MiB so this is always safe there.
    vmem_limit = int(min(max(2 * need + (4 << 20), 16 << 20), 40 << 20))

    kernel = functools.partial(_output_projection_kernel,
                               C=c, H=h, W=w, LPAD=lpad)

    out = pl.pallas_call(
        kernel,
        out_shape=jax.ShapeDtypeStruct((n, w * h), jnp.float32),
        grid_spec=pltpu.PrefetchScalarGridSpec(
            num_scalar_prefetch=0,
            grid=grid,
            in_specs=[
                pl.BlockSpec((bt, c * hw), lambda i: (i, 0)),
                pl.BlockSpec(memory_space=pltpu.MemorySpace.SMEM),   # taps
                pl.BlockSpec(memory_space=pltpu.MemorySpace.SMEM),   # bias
            ],
            out_specs=pl.BlockSpec((bt, w * h), lambda i: (i, 0)),
            scratch_shapes=[pltpu.VMEM((c, bt, padhw), jnp.float32)],
        ),
        compiler_params=pltpu.CompilerParams(
            dimension_semantics=("parallel",),
            vmem_limit_bytes=vmem_limit,
        ),
    )(x2, wf, b)

    # (N, W*H) is already w-major / h-minor -> free dim split.
    return out.reshape(n, w, h, 1)


def _reference(x, weight, bias):
    # Pure-JAX reference: conv with flipped kernel, padding=1, then
    # transpose(3,1) exactly like the PyTorch module.
    w_conv = jnp.transpose(weight, (1, 0, 2, 3))[:, :, ::-1, ::-1]  # (1,C,3,3)
    y = lax.conv_general_dilated(
        x, w_conv, window_strides=(1, 1), padding=((1, 1), (1, 1)),
        dimension_numbers=("NCHW", "OIHW", "NCHW"))
    y = y + bias.reshape(1, 1, 1, 1)                          # (N, 1, H, W)
    return jnp.transpose(y, (0, 3, 2, 1))                     # (N, W, H, 1)


if __name__ == "__main__":
    key = jax.random.PRNGKey(0)
    N, C, H, W = 2, 4, 16, 16
    k_x, k_w, k_b = jax.random.split(key, 3)

    x = jax.random.normal(k_x, (N, C, H, W), dtype=jnp.float32)
    # Deterministic synthetic parameters matching ConvTranspose2d(C, 1, (3,3)).
    weight = 0.1 * jax.random.normal(k_w, (C, 1, 3, 3), dtype=jnp.float32)
    bias = 0.1 * jax.random.normal(k_b, (1,), dtype=jnp.float32)

    out = output_projection_layer(x, weight, bias)
    out = jax.block_until_ready(out)

    ref = _reference(x, weight, bias)
    assert out.shape == (N, W, H, 1), out.shape
    np.testing.assert_allclose(np.asarray(out), np.asarray(ref),
                               rtol=1e-4, atol=1e-4)
    print("KERNEL_OK")
</pallas_src>

<mosaic_0001>
module attributes {stable_mosaic.version = 11 : i64} {
  func.func @_output_projection_kernel(%arg0: i32, %arg1: memref<2x1024xf32, #tpu.memory_space<vmem>>, %arg2: memref<36xf32, #tpu.memory_space<smem>>, %arg3: memref<1xf32, #tpu.memory_space<smem>>, %arg4: memref<2x256xf32, #tpu.memory_space<vmem>>, %arg5: memref<4x2x512xf32, #tpu.memory_space<vmem>>) attributes {dimension_semantics = [#tpu.dimension_semantics<parallel>], iteration_bounds = array<i64: 1>, scalar_prefetch = 0 : i64, scratch_operands = 1 : i64, tpu.core_type = #tpu.core_type<tc>, window_params = [{transform_indices = @transform_0, window_bounds = array<i64: 2, 1024>}, {transform_indices = @transform_1, window_bounds = array<i64: 36>}, {transform_indices = @transform_2, window_bounds = array<i64: 1>}, {transform_indices = @transform_3, window_bounds = array<i64: 2, 256>}]} {
    %cst = arith.constant 0.000000e+00 : f32
    %0 = vector.broadcast %cst : f32 to vector<4x2x128xf32>
    %c0 = arith.constant 0 : index
    %c0_0 = arith.constant 0 : index
    %c0_1 = arith.constant 0 : index
    %1 = vector.load %arg5[%c0, %c0_0, %c0_1] : memref<4x2x512xf32, #tpu.memory_space<vmem>>, vector<4x2x128xf32>
    tpu.vector_store %arg5[%c0, %c0_0, %c0_1], %0 {strides = array<i32>} : memref<4x2x512xf32, #tpu.memory_space<vmem>>, vector<4x2x128xf32>,
    %cst_2 = arith.constant 0.000000e+00 : f32
    %2 = vector.broadcast %cst_2 : f32 to vector<4x2x128xf32>
    %c0_3 = arith.constant 0 : index
    %c0_4 = arith.constant 0 : index
    %c384 = arith.constant 384 : index
    %3 = vector.load %arg5[%c0_3, %c0_4, %c384] : memref<4x2x512xf32, #tpu.memory_space<vmem>>, vector<4x2x128xf32>
    tpu.vector_store %arg5[%c0_3, %c0_4, %c384], %2 {strides = array<i32>} : memref<4x2x512xf32, #tpu.memory_space<vmem>>, vector<4x2x128xf32>,
    %c0_5 = arith.constant 0 : index
    %c0_6 = arith.constant 0 : index
    %4 = vector.load %arg1[%c0_5, %c0_6] : memref<2x1024xf32, #tpu.memory_space<vmem>>, vector<2x256xf32>
    %c0_7 = arith.constant 0 : index
    %c0_8 = arith.constant 0 : index
    %c128 = arith.constant 128 : index
    %5 = vector.load %arg5[%c0_7, %c0_8, %c128] : memref<4x2x512xf32, #tpu.memory_space<vmem>>, vector<1x2x256xf32>
    %6 = vector.shape_cast %5 : vector<1x2x256xf32> to vector<2x256xf32>
    %7 = vector.shape_cast %4 : vector<2x256xf32> to vector<1x2x256xf32>
    tpu.vector_store %arg5[%c0_7, %c0_8, %c128], %7 {strides = array<i32>} : memref<4x2x512xf32, #tpu.memory_space<vmem>>, vector<1x2x256xf32>,
    %c0_9 = arith.constant 0 : index
    %c256 = arith.constant 256 : index
    %8 = vector.load %arg1[%c0_9, %c256] : memref<2x1024xf32, #tpu.memory_space<vmem>>, vector<2x256xf32>
    %c1 = arith.constant 1 : index
    %c0_10 = arith.constant 0 : index
    %c128_11 = arith.constant 128 : index
    %9 = vector.load %arg5[%c1, %c0_10, %c128_11] : memref<4x2x512xf32, #tpu.memory_space<vmem>>, vector<1x2x256xf32>
    %10 = vector.shape_cast %9 : vector<1x2x256xf32> to vector<2x256xf32>
    %11 = vector.shape_cast %8 : vector<2x256xf32> to vector<1x2x256xf32>
    tpu.vector_store %arg5[%c1, %c0_10, %c128_11], %11 {strides = array<i32>} : memref<4x2x512xf32, #tpu.memory_space<vmem>>, vector<1x2x256xf32>,
    %c0_12 = arith.constant 0 : index
    %c512 = arith.constant 512 : index
    %12 = vector.load %arg1[%c0_12, %c512] : memref<2x1024xf32, #tpu.memory_space<vmem>>, vector<2x256xf32>
    %c2 = arith.constant 2 : index
    %c0_13 = arith.constant 0 : index
    %c128_14 = arith.constant 128 : index
    %13 = vector.load %arg5[%c2, %c0_13, %c128_14] : memref<4x2x512xf32, #tpu.memory_space<vmem>>, vector<1x2x256xf32>
    %14 = vector.shape_cast %13 : vector<1x2x256xf32> to vector<2x256xf32>
    %15 = vector.shape_cast %12 : vector<2x256xf32> to vector<1x2x256xf32>
    tpu.vector_store %arg5[%c2, %c0_13, %c128_14], %15 {strides = array<i32>} : memref<4x2x512xf32, #tpu.memory_space<vmem>>, vector<1x2x256xf32>,
    %c0_15 = arith.constant 0 : index
    %c768 = arith.constant 768 : index
    %16 = vector.load %arg1[%c0_15, %c768] : memref<2x1024xf32, #tpu.memory_space<vmem>>, vector<2x256xf32>
    %c3 = arith.constant 3 : index
    %c0_16 = arith.constant 0 : index
    %c128_17 = arith.constant 128 : index
    %17 = vector.load %arg5[%c3, %c0_16, %c128_17] : memref<4x2x512xf32, #tpu.memory_space<vmem>>, vector<1x2x256xf32>
    %18 = vector.shape_cast %17 : vector<1x2x256xf32> to vector<2x256xf32>
    %19 = vector.shape_cast %16 : vector<2x256xf32> to vector<1x2x256xf32>
    tpu.vector_store %arg5[%c3, %c0_16, %c128_17], %19 {strides = array<i32>} : memref<4x2x512xf32, #tpu.memory_space<vmem>>, vector<1x2x256xf32>,
    %cst_18 = arith.constant 0.000000e+00 : f32
    %20 = vector.broadcast %cst_18 : f32 to vector<2x256xf32>
    %c0_19 = arith.constant 0 : index
    %21 = memref.load %arg3[%c0_19] : memref<1xf32, #tpu.memory_space<smem>>
    %22 = vector.broadcast %21 : f32 to vector<2x256xf32>
    %cst_20 = arith.constant 0.000000e+00 : f32
    %23 = vector.broadcast %cst_20 : f32 to vector<2x256xf32>
    %c0_21 = arith.constant 0 : index
    %c0_22 = arith.constant 0 : index
    %c111 = arith.constant 111 : index
    %24 = vector.load %arg5[%c0_21, %c0_22, %c111] : memref<4x2x512xf32, #tpu.memory_space<vmem>>, vector<1x2x256xf32>
    %25 = vector.shape_cast %24 : vector<1x2x256xf32> to vector<2x256xf32>
    %c0_23 = arith.constant 0 : index
    %26 = memref.load %arg2[%c0_23] : memref<36xf32, #tpu.memory_space<smem>>
    %27 = vector.broadcast %26 : f32 to vector<2x256xf32>
    %28 = arith.mulf %25, %27 : vector<2x256xf32>
    %29 = arith.addf %20, %28 : vector<2x256xf32>
    %c0_24 = arith.constant 0 : index
    %c0_25 = arith.constant 0 : index
    %c112 = arith.constant 112 : index
    %30 = vector.load %arg5[%c0_24, %c0_25, %c112] : memref<4x2x512xf32, #tpu.memory_space<vmem>>, vector<1x2x256xf32>
    %31 = vector.shape_cast %30 : vector<1x2x256xf32> to vector<2x256xf32>
    %c1_26 = arith.constant 1 : index
    %32 = memref.load %arg2[%c1_26] : memref<36xf32, #tpu.memory_space<smem>>
    %33 = vector.broadcast %32 : f32 to vector<2x256xf32>
    %34 = arith.mulf %31, %33 : vector<2x256xf32>
    %35 = arith.addf %22, %34 : vector<2x256xf32>
    %c0_27 = arith.constant 0 : index
    %c0_28 = arith.constant 0 : index
    %c113 = arith.constant 113 : index
    %36 = vector.load %arg5[%c0_27, %c0_28, %c113] : memref<4x2x512xf32, #tpu.memory_space<vmem>>, vector<1x2x256xf32>
    %37 = vector.shape_cast %36 : vector<1x2x256xf32> to vector<2x256xf32>
    %c2_29 = arith.constant 2 : index
    %38 = memref.load %arg2[%c2_29] : memref<36xf32, #tpu.memory_space<smem>>
    %39 = vector.broadcast %38 : f32 to vector<2x256xf32>
    %40 = arith.mulf %37, %39 : vector<2x256xf32>
    %41 = arith.addf %23, %40 : vector<2x256xf32>
    %c0_30 = arith.constant 0 : index
    %c0_31 = arith.constant 0 : index
    %c127 = arith.constant 127 : index
    %42 = vector.load %arg5[%c0_30, %c0_31, %c127] : memref<4x2x512xf32, #tpu.memory_space<vmem>>, vector<1x2x256xf32>
    %43 = vector.shape_cast %42 : vector<1x2x256xf32> to vector<2x256xf32>
    %c3_32 = arith.constant 3 : index
    %44 = memref.load %arg2[%c3_32] : memref<36xf32, #tpu.memory_space<smem>>
    %45 = vector.broadcast %44 : f32 to vector<2x256xf32>
    %46 = arith.mulf %43, %45 : vector<2x256xf32>
    %47 = arith.addf %29, %46 : vector<2x256xf32>
    %c0_33 = arith.constant 0 : index
    %c0_34 = arith.constant 0 : index
    %c128_35 = arith.constant 128 : index
    %48 = vector.load %arg5[%c0_33, %c0_34, %c128_35] : memref<4x2x512xf32, #tpu.memory_space<vmem>>, vector<1x2x256xf32>
    %49 = vector.shape_cast %48 : vector<1x2x256xf32> to vector<2x256xf32>
    %c4 = arith.constant 4 : index
    %50 = memref.load %arg2[%c4] : memref<36xf32, #tpu.memory_space<smem>>
    %51 = vector.broadcast %50 : f32 to vector<2x256xf32>
    %52 = arith.mulf %49, %51 : vector<2x256xf32>
    %53 = arith.addf %35, %52 : vector<2x256xf32>
    %c0_36 = arith.constant 0 : index
    %c0_37 = arith.constant 0 : index
    %c129 = arith.constant 129 : index
    %54 = vector.load %arg5[%c0_36, %c0_37, %c129] : memref<4x2x512xf32, #tpu.memory_space<vmem>>, vector<1x2x256xf32>
    %55 = vector.shape_cast %54 : vector<1x2x256xf32> to vector<2x256xf32>
    %c5 = arith.constant 5 : index
    %56 = memref.load %arg2[%c5] : memref<36xf32, #tpu.memory_space<smem>>
    %57 = vector.broadcast %56 : f32 to vector<2x256xf32>
    %58 = arith.mulf %55, %57 : vector<2x256xf32>
    %59 = arith.addf %41, %58 : vector<2x256xf32>
    %c0_38 = arith.constant 0 : index
    %c0_39 = arith.constant 0 : index
    %c143 = arith.constant 143 : index
    %60 = vector.load %arg5[%c0_38, %c0_39, %c143] : memref<4x2x512xf32, #tpu.memory_space<vmem>>, vector<1x2x256xf32>
    %61 = vector.shape_cast %60 : vector<1x2x256xf32> to vector<2x256xf32>
    %c6 = arith.constant 6 : index
    %62 = memref.load %arg2[%c6] : memref<36xf32, #tpu.memory_space<smem>>
    %63 = vector.broadcast %62 : f32 to vector<2x256xf32>
    %64 = arith.mulf %61, %63 : vector<2x256xf32>
    %65 = arith.addf %47, %64 : vector<2x256xf32>
    %c0_40 = arith.constant 0 : index
    %c0_41 = arith.constant 0 : index
    %c144 = arith.constant 144 : index
    %66 = vector.load %arg5[%c0_40, %c0_41, %c144] : memref<4x2x512xf32, #tpu.memory_space<vmem>>, vector<1x2x256xf32>
    %67 = vector.shape_cast %66 : vector<1x2x256xf32> to vector<2x256xf32>
    %c7 = arith.constant 7 : index
    %68 = memref.load %arg2[%c7] : memref<36xf32, #tpu.memory_space<smem>>
    %69 = vector.broadcast %68 : f32 to vector<2x256xf32>
    %70 = arith.mulf %67, %69 : vector<2x256xf32>
    %71 = arith.addf %53, %70 : vector<2x256xf32>
    %c0_42 = arith.constant 0 : index
    %c0_43 = arith.constant 0 : index
    %c145 = arith.constant 145 : index
    %72 = vector.load %arg5[%c0_42, %c0_43, %c145] : memref<4x2x512xf32, #tpu.memory_space<vmem>>, vector<1x2x256xf32>
    %73 = vector.shape_cast %72 : vector<1x2x256xf32> to vector<2x256xf32>
    %c8 = arith.constant 8 : index
    %74 = memref.load %arg2[%c8] : memref<36xf32, #tpu.memory_space<smem>>
    %75 = vector.broadcast %74 : f32 to vector<2x256xf32>
    %76 = arith.mulf %73, %75 : vector<2x256xf32>
    %77 = arith.addf %59, %76 : vector<2x256xf32>
    %c1_44 = arith.constant 1 : index
    %c0_45 = arith.constant 0 : index
    %c111_46 = arith.constant 111 : index
    %78 = vector.load %arg5[%c1_44, %c0_45, %c111_46] : memref<4x2x512xf32, #tpu.memory_space<vmem>>, vector<1x2x256xf32>
    %79 = vector.shape_cast %78 : vector<1x2x256xf32> to vector<2x256xf32>
    %c9 = arith.constant 9 : index
    %80 = memref.load %arg2[%c9] : memref<36xf32, #tpu.memory_space<smem>>
    %81 = vector.broadcast %80 : f32 to vector<2x256xf32>
    %82 = arith.mulf %79, %81 : vector<2x256xf32>
    %83 = arith.addf %65, %82 : vector<2x256xf32>
    %c1_47 = arith.constant 1 : index
    %c0_48 = arith.constant 0 : index
    %c112_49 = arith.constant 112 : index
    %84 = vector.load %arg5[%c1_47, %c0_48, %c112_49] : memref<4x2x512xf32, #tpu.memory_space<vmem>>, vector<1x2x256xf32>
    %85 = vector.shape_cast %84 : vector<1x2x256xf32> to vector<2x256xf32>
    %c10 = arith.constant 10 : index
    %86 = memref.load %arg2[%c10] : memref<36xf32, #tpu.memory_space<smem>>
    %87 = vector.broadcast %86 : f32 to vector<2x256xf32>
    %88 = arith.mulf %85, %87 : vector<2x256xf32>
    %89 = arith.addf %71, %88 : vector<2x256xf32>
    %c1_50 = arith.constant 1 : index
    %c0_51 = arith.constant 0 : index
    %c113_52 = arith.constant 113 : index
    %90 = vector.load %arg5[%c1_50, %c0_51, %c113_52] : memref<4x2x512xf32, #tpu.memory_space<vmem>>, vector<1x2x256xf32>
    %91 = vector.shape_cast %90 : vector<1x2x256xf32> to vector<2x256xf32>
    %c11 = arith.constant 11 : index
    %92 = memref.load %arg2[%c11] : memref<36xf32, #tpu.memory_space<smem>>
    %93 = vector.broadcast %92 : f32 to vector<2x256xf32>
    %94 = arith.mulf %91, %93 : vector<2x256xf32>
    %95 = arith.addf %77, %94 : vector<2x256xf32>
    %c1_53 = arith.constant 1 : index
    %c0_54 = arith.constant 0 : index
    %c127_55 = arith.constant 127 : index
    %96 = vector.load %arg5[%c1_53, %c0_54, %c127_55] : memref<4x2x512xf32, #tpu.memory_space<vmem>>, vector<1x2x256xf32>
    %97 = vector.shape_cast %96 : vector<1x2x256xf32> to vector<2x256xf32>
    %c12 = arith.constant 12 : index
    %98 = memref.load %arg2[%c12] : memref<36xf32, #tpu.memory_space<smem>>
    %99 = vector.broadcast %98 : f32 to vector<2x256xf32>
    %100 = arith.mulf %97, %99 : vector<2x256xf32>
    %101 = arith.addf %83, %100 : vector<2x256xf32>
    %c1_56 = arith.constant 1 : index
    %c0_57 = arith.constant 0 : index
    %c128_58 = arith.constant 128 : index
    %102 = vector.load %arg5[%c1_56, %c0_57, %c128_58] : memref<4x2x512xf32, #tpu.memory_space<vmem>>, vector<1x2x256xf32>
    %103 = vector.shape_cast %102 : vector<1x2x256xf32> to vector<2x256xf32>
    %c13 = arith.constant 13 : index
    %104 = memref.load %arg2[%c13] : memref<36xf32, #tpu.memory_space<smem>>
    %105 = vector.broadcast %104 : f32 to vector<2x256xf32>
    %106 = arith.mulf %103, %105 : vector<2x256xf32>
    %107 = arith.addf %89, %106 : vector<2x256xf32>
    %c1_59 = arith.constant 1 : index
    %c0_60 = arith.constant 0 : index
    %c129_61 = arith.constant 129 : index
    %108 = vector.load %arg5[%c1_59, %c0_60, %c129_61] : memref<4x2x512xf32, #tpu.memory_space<vmem>>, vector<1x2x256xf32>
    %109 = vector.shape_cast %108 : vector<1x2x256xf32> to vector<2x256xf32>
    %c14 = arith.constant 14 : index
    %110 = memref.load %arg2[%c14] : memref<36xf32, #tpu.memory_space<smem>>
    %111 = vector.broadcast %110 : f32 to vector<2x256xf32>
    %112 = arith.mulf %109, %111 : vector<2x256xf32>
    %113 = arith.addf %95, %112 : vector<2x256xf32>
    %c1_62 = arith.constant 1 : index
    %c0_63 = arith.constant 0 : index
    %c143_64 = arith.constant 143 : index
    %114 = vector.load %arg5[%c1_62, %c0_63, %c143_64] : memref<4x2x512xf32, #tpu.memory_space<vmem>>, vector<1x2x256xf32>
    %115 = vector.shape_cast %114 : vector<1x2x256xf32> to vector<2x256xf32>
    %c15 = arith.constant 15 : index
    %116 = memref.load %arg2[%c15] : memref<36xf32, #tpu.memory_space<smem>>
    %117 = vector.broadcast %116 : f32 to vector<2x256xf32>
    %118 = arith.mulf %115, %117 : vector<2x256xf32>
    %119 = arith.addf %101, %118 : vector<2x256xf32>
    %c1_65 = arith.constant 1 : index
    %c0_66 = arith.constant 0 : index
    %c144_67 = arith.constant 144 : index
    %120 = vector.load %arg5[%c1_65, %c0_66, %c144_67] : memref<4x2x512xf32, #tpu.memory_space<vmem>>, vector<1x2x256xf32>
    %121 = vector.shape_cast %120 : vector<1x2x256xf32> to vector<2x256xf32>
    %c16 = arith.constant 16 : index
    %122 = memref.load %arg2[%c16] : memref<36xf32, #tpu.memory_space<smem>>
    %123 = vector.broadcast %122 : f32 to vector<2x256xf32>
    %124 = arith.mulf %121, %123 : vector<2x256xf32>
    %125 = arith.addf %107, %124 : vector<2x256xf32>
    %c1_68 = arith.constant 1 : index
    %c0_69 = arith.constant 0 : index
    %c145_70 = arith.constant 145 : index
    %126 = vector.load %arg5[%c1_68, %c0_69, %c145_70] : memref<4x2x512xf32, #tpu.memory_space<vmem>>, vector<1x2x256xf32>
    %127 = vector.shape_cast %126 : vector<1x2x256xf32> to vector<2x256xf32>
    %c17 = arith.constant 17 : index
    %128 = memref.load %arg2[%c17] : memref<36xf32, #tpu.memory_space<smem>>
    %129 = vector.broadcast %128 : f32 to vector<2x256xf32>
    %130 = arith.mulf %127, %129 : vector<2x256xf32>
    %131 = arith.addf %113, %130 : vector<2x256xf32>
    %c2_71 = arith.constant 2 : index
    %c0_72 = arith.constant 0 : index
    %c111_73 = arith.constant 111 : index
    %132 = vector.load %arg5[%c2_71, %c0_72, %c111_73] : memref<4x2x512xf32, #tpu.memory_space<vmem>>, vector<1x2x256xf32>
    %133 = vector.shape_cast %132 : vector<1x2x256xf32> to vector<2x256xf32>
    %c18 = arith.constant 18 : index
    %134 = memref.load %arg2[%c18] : memref<36xf32, #tpu.memory_space<smem>>
    %135 = vector.broadcast %134 : f32 to vector<2x256xf32>
    %136 = arith.mulf %133, %135 : vector<2x256xf32>
    %137 = arith.addf %119, %136 : vector<2x256xf32>
    %c2_74 = arith.constant 2 : index
    %c0_75 = arith.constant 0 : index
    %c112_76 = arith.constant 112 : index
    %138 = vector.load %arg5[%c2_74, %c0_75, %c112_76] : memref<4x2x512xf32, #tpu.memory_space<vmem>>, vector<1x2x256xf32>
    %139 = vector.shape_cast %138 : vector<1x2x256xf32> to vector<2x256xf32>
    %c19 = arith.constant 19 : index
    %140 = memref.load %arg2[%c19] : memref<36xf32, #tpu.memory_space<smem>>
    %141 = vector.broadcast %140 : f32 to vector<2x256xf32>
    %142 = arith.mulf %139, %141 : vector<2x256xf32>
    %143 = arith.addf %125, %142 : vector<2x256xf32>
    %c2_77 = arith.constant 2 : index
    %c0_78 = arith.constant 0 : index
    %c113_79 = arith.constant 113 : index
    %144 = vector.load %arg5[%c2_77, %c0_78, %c113_79] : memref<4x2x512xf32, #tpu.memory_space<vmem>>, vector<1x2x256xf32>
    %145 = vector.shape_cast %144 : vector<1x2x256xf32> to vector<2x256xf32>
    %c20 = arith.constant 20 : index
    %146 = memref.load %arg2[%c20] : memref<36xf32, #tpu.memory_space<smem>>
    %147 = vector.broadcast %146 : f32 to vector<2x256xf32>
    %148 = arith.mulf %145, %147 : vector<2x256xf32>
    %149 = arith.addf %131, %148 : vector<2x256xf32>
    %c2_80 = arith.constant 2 : index
    %c0_81 = arith.constant 0 : index
    %c127_82 = arith.constant 127 : index
    %150 = vector.load %arg5[%c2_80, %c0_81, %c127_82] : memref<4x2x512xf32, #tpu.memory_space<vmem>>, vector<1x2x256xf32>
    %151 = vector.shape_cast %150 : vector<1x2x256xf32> to vector<2x256xf32>
    %c21 = arith.constant 21 : index
    %152 = memref.load %arg2[%c21] : memref<36xf32, #tpu.memory_space<smem>>
    %153 = vector.broadcast %152 : f32 to vector<2x256xf32>
    %154 = arith.mulf %151, %153 : vector<2x256xf32>
    %155 = arith.addf %137, %154 : vector<2x256xf32>
    %c2_83 = arith.constant 2 : index
    %c0_84 = arith.constant 0 : index
    %c128_85 = arith.constant 128 : index
    %156 = vector.load %arg5[%c2_83, %c0_84, %c128_85] : memref<4x2x512xf32, #tpu.memory_space<vmem>>, vector<1x2x256xf32>
    %157 = vector.shape_cast %156 : vector<1x2x256xf32> to vector<2x256xf32>
    %c22 = arith.constant 22 : index
    %158 = memref.load %arg2[%c22] : memref<36xf32, #tpu.memory_space<smem>>
    %159 = vector.broadcast %158 : f32 to vector<2x256xf32>
    %160 = arith.mulf %157, %159 : vector<2x256xf32>
    %161 = arith.addf %143, %160 : vector<2x256xf32>
    %c2_86 = arith.constant 2 : index
    %c0_87 = arith.constant 0 : index
    %c129_88 = arith.constant 129 : index
    %162 = vector.load %arg5[%c2_86, %c0_87, %c129_88] : memref<4x2x512xf32, #tpu.memory_space<vmem>>, vector<1x2x256xf32>
    %163 = vector.shape_cast %162 : vector<1x2x256xf32> to vector<2x256xf32>
    %c23 = arith.constant 23 : index
    %164 = memref.load %arg2[%c23] : memref<36xf32, #tpu.memory_space<smem>>
    %165 = vector.broadcast %164 : f32 to vector<2x256xf32>
    %166 = arith.mulf %163, %165 : vector<2x256xf32>
    %167 = arith.addf %149, %166 : vector<2x256xf32>
    %c2_89 = arith.constant 2 : index
    %c0_90 = arith.constant 0 : index
    %c143_91 = arith.constant 143 : index
    %168 = vector.load %arg5[%c2_89, %c0_90, %c143_91] : memref<4x2x512xf32, #tpu.memory_space<vmem>>, vector<1x2x256xf32>
    %169 = vector.shape_cast %168 : vector<1x2x256xf32> to vector<2x256xf32>
    %c24 = arith.constant 24 : index
    %170 = memref.load %arg2[%c24] : memref<36xf32, #tpu.memory_space<smem>>
    %171 = vector.broadcast %170 : f32 to vector<2x256xf32>
    %172 = arith.mulf %169, %171 : vector<2x256xf32>
    %173 = arith.addf %155, %172 : vector<2x256xf32>
    %c2_92 = arith.constant 2 : index
    %c0_93 = arith.constant 0 : index
    %c144_94 = arith.constant 144 : index
    %174 = vector.load %arg5[%c2_92, %c0_93, %c144_94] : memref<4x2x512xf32, #tpu.memory_space<vmem>>, vector<1x2x256xf32>
    %175 = vector.shape_cast %174 : vector<1x2x256xf32> to vector<2x256xf32>
    %c25 = arith.constant 25 : index
    %176 = memref.load %arg2[%c25] : memref<36xf32, #tpu.memory_space<smem>>
    %177 = vector.broadcast %176 : f32 to vector<2x256xf32>
    %178 = arith.mulf %175, %177 : vector<2x256xf32>
    %179 = arith.addf %161, %178 : vector<2x256xf32>
    %c2_95 = arith.constant 2 : index
    %c0_96 = arith.constant 0 : index
    %c145_97 = arith.constant 145 : index
    %180 = vector.load %arg5[%c2_95, %c0_96, %c145_97] : memref<4x2x512xf32, #tpu.memory_space<vmem>>, vector<1x2x256xf32>
    %181 = vector.shape_cast %180 : vector<1x2x256xf32> to vector<2x256xf32>
    %c26 = arith.constant 26 : index
    %182 = memref.load %arg2[%c26] : memref<36xf32, #tpu.memory_space<smem>>
    %183 = vector.broadcast %182 : f32 to vector<2x256xf32>
    %184 = arith.mulf %181, %183 : vector<2x256xf32>
    %185 = arith.addf %167, %184 : vector<2x256xf32>
    %c3_98 = arith.constant 3 : index
    %c0_99 = arith.constant 0 : index
    %c111_100 = arith.constant 111 : index
    %186 = vector.load %arg5[%c3_98, %c0_99, %c111_100] : memref<4x2x512xf32, #tpu.memory_space<vmem>>, vector<1x2x256xf32>
    %187 = vector.shape_cast %186 : vector<1x2x256xf32> to vector<2x256xf32>
    %c27 = arith.constant 27 : index
    %188 = memref.load %arg2[%c27] : memref<36xf32, #tpu.memory_space<smem>>
    %189 = vector.broadcast %188 : f32 to vector<2x256xf32>
    %190 = arith.mulf %187, %189 : vector<2x256xf32>
    %191 = arith.addf %173, %190 : vector<2x256xf32>
    %c3_101 = arith.constant 3 : index
    %c0_102 = arith.constant 0 : index
    %c112_103 = arith.constant 112 : index
    %192 = vector.load %arg5[%c3_101, %c0_102, %c112_103] : memref<4x2x512xf32, #tpu.memory_space<vmem>>, vector<1x2x256xf32>
    %193 = vector.shape_cast %192 : vector<1x2x256xf32> to vector<2x256xf32>
    %c28 = arith.constant 28 : index
    %194 = memref.load %arg2[%c28] : memref<36xf32, #tpu.memory_space<smem>>
    %195 = vector.broadcast %194 : f32 to vector<2x256xf32>
    %196 = arith.mulf %193, %195 : vector<2x256xf32>
    %197 = arith.addf %179, %196 : vector<2x256xf32>
    %c3_104 = arith.constant 3 : index
    %c0_105 = arith.constant 0 : index
    %c113_106 = arith.constant 113 : index
    %198 = vector.load %arg5[%c3_104, %c0_105, %c113_106] : memref<4x2x512xf32, #tpu.memory_space<vmem>>, vector<1x2x256xf32>
    %199 = vector.shape_cast %198 : vector<1x2x256xf32> to vector<2x256xf32>
    %c29 = arith.constant 29 : index
    %200 = memref.load %arg2[%c29] : memref<36xf32, #tpu.memory_space<smem>>
    %201 = vector.broadcast %200 : f32 to vector<2x256xf32>
    %202 = arith.mulf %199, %201 : vector<2x256xf32>
    %203 = arith.addf %185, %202 : vector<2x256xf32>
    %c3_107 = arith.constant 3 : index
    %c0_108 = arith.constant 0 : index
    %c127_109 = arith.constant 127 : index
    %204 = vector.load %arg5[%c3_107, %c0_108, %c127_109] : memref<4x2x512xf32, #tpu.memory_space<vmem>>, vector<1x2x256xf32>
    %205 = vector.shape_cast %204 : vector<1x2x256xf32> to vector<2x256xf32>
    %c30 = arith.constant 30 : index
    %206 = memref.load %arg2[%c30] : memref<36xf32, #tpu.memory_space<smem>>
    %207 = vector.broadcast %206 : f32 to vector<2x256xf32>
    %208 = arith.mulf %205, %207 : vector<2x256xf32>
    %209 = arith.addf %191, %208 : vector<2x256xf32>
    %c3_110 = arith.constant 3 : index
    %c0_111 = arith.constant 0 : index
    %c128_112 = arith.constant 128 : index
    %210 = vector.load %arg5[%c3_110, %c0_111, %c128_112] : memref<4x2x512xf32, #tpu.memory_space<vmem>>, vector<1x2x256xf32>
    %211 = vector.shape_cast %210 : vector<1x2x256xf32> to vector<2x256xf32>
    %c31 = arith.constant 31 : index
    %212 = memref.load %arg2[%c31] : memref<36xf32, #tpu.memory_space<smem>>
    %213 = vector.broadcast %212 : f32 to vector<2x256xf32>
    %214 = arith.mulf %211, %213 : vector<2x256xf32>
    %215 = arith.addf %197, %214 : vector<2x256xf32>
    %c3_113 = arith.constant 3 : index
    %c0_114 = arith.constant 0 : index
    %c129_115 = arith.constant 129 : index
    %216 = vector.load %arg5[%c3_113, %c0_114, %c129_115] : memref<4x2x512xf32, #tpu.memory_space<vmem>>, vector<1x2x256xf32>
    %217 = vector.shape_cast %216 : vector<1x2x256xf32> to vector<2x256xf32>
    %c32 = arith.constant 32 : index
    %218 = memref.load %arg2[%c32] : memref<36xf32, #tpu.memory_space<smem>>
    %219 = vector.broadcast %218 : f32 to vector<2x256xf32>
    %220 = arith.mulf %217, %219 : vector<2x256xf32>
    %221 = arith.addf %203, %220 : vector<2x256xf32>
    %c3_116 = arith.constant 3 : index
    %c0_117 = arith.constant 0 : index
    %c143_118 = arith.constant 143 : index
    %222 = vector.load %arg5[%c3_116, %c0_117, %c143_118] : memref<4x2x512xf32, #tpu.memory_space<vmem>>, vector<1x2x256xf32>
    %223 = vector.shape_cast %222 : vector<1x2x256xf32> to vector<2x256xf32>
    %c33 = arith.constant 33 : index
    %224 = memref.load %arg2[%c33] : memref<36xf32, #tpu.memory_space<smem>>
    %225 = vector.broadcast %224 : f32 to vector<2x256xf32>
    %226 = arith.mulf %223, %225 : vector<2x256xf32>
    %227 = arith.addf %209, %226 : vector<2x256xf32>
    %c3_119 = arith.constant 3 : index
    %c0_120 = arith.constant 0 : index
    %c144_121 = arith.constant 144 : index
    %228 = vector.load %arg5[%c3_119, %c0_120, %c144_121] : memref<4x2x512xf32, #tpu.memory_space<vmem>>, vector<1x2x256xf32>
    %229 = vector.shape_cast %228 : vector<1x2x256xf32> to vector<2x256xf32>
    %c34 = arith.constant 34 : index
    %230 = memref.load %arg2[%c34] : memref<36xf32, #tpu.memory_space<smem>>
    %231 = vector.broadcast %230 : f32 to vector<2x256xf32>
    %232 = arith.mulf %229, %231 : vector<2x256xf32>
    %233 = arith.addf %215, %232 : vector<2x256xf32>
    %c3_122 = arith.constant 3 : index
    %c0_123 = arith.constant 0 : index
    %c145_124 = arith.constant 145 : index
    %234 = vector.load %arg5[%c3_122, %c0_123, %c145_124] : memref<4x2x512xf32, #tpu.memory_space<vmem>>, vector<1x2x256xf32>
    %235 = vector.shape_cast %234 : vector<1x2x256xf32> to vector<2x256xf32>
    %c35 = arith.constant 35 : index
    %236 = memref.load %arg2[%c35] : memref<36xf32, #tpu.memory_space<smem>>
    %237 = vector.broadcast %236 : f32 to vector<2x256xf32>
    %238 = arith.mulf %235, %237 : vector<2x256xf32>
    %239 = arith.addf %221, %238 : vector<2x256xf32>
    %240 = tpu.iota {dimensions = array<i32: 1>} : vector<1x256xi32>
    %c16_i32 = arith.constant 16 : i32
    %c0_i32 = arith.constant 0 : i32
    %241 = arith.cmpi eq, %c16_i32, %c0_i32 : i32
    %c1_i32 = arith.constant 1 : i32
    %242 = arith.select %241, %c1_i32, %c16_i32 : i32
    %243 = vector.broadcast %242 : i32 to vector<1x256xi32>
    %244 = arith.remsi %240, %243 : vector<1x256xi32>
    %c0_i32_125 = arith.constant 0 : i32
    %245 = vector.broadcast %c0_i32_125 : i32 to vector<1x256xi32>
    %246 = arith.cmpi ne, %244, %245 : vector<1x256xi32>
    %c0_i32_126 = arith.constant 0 : i32
    %247 = vector.broadcast %c0_i32_126 : i32 to vector<1x256xi32>
    %248 = arith.cmpi slt, %244, %247 : vector<1x256xi32>
    %c0_i32_127 = arith.constant 0 : i32
    %249 = arith.cmpi slt, %242, %c0_i32_127 : i32
    %250 = vector.broadcast %249 : i1 to vector<1x256xi1>
    %251 = vector.broadcast %250 : vector<1x256xi1> to vector<1x256xi1>
    %252 = arith.xori %248, %251 : vector<1x256xi1>
    %253 = arith.andi %252, %246 : vector<1x256xi1>
    %254 = vector.broadcast %242 : i32 to vector<1x256xi32>
    %255 = arith.addi %244, %254 : vector<1x256xi32>
    %256 = arith.select %253, %255, %244 : vector<1x256xi1>, vector<1x256xi32>
    %c0_i32_128 = arith.constant 0 : i32
    %257 = vector.broadcast %c0_i32_128 : i32 to vector<1x256xi32>
    %258 = arith.cmpi ne, %256, %257 : vector<1x256xi32>
    %259 = arith.extui %258 : vector<1x256xi1> to vector<1x256xi32>
    %260 = arith.sitofp %259 : vector<1x256xi32> to vector<1x256xf32>
    %c15_i32 = arith.constant 15 : i32
    %261 = vector.broadcast %c15_i32 : i32 to vector<1x256xi32>
    %262 = arith.cmpi ne, %256, %261 : vector<1x256xi32>
    %263 = arith.extui %262 : vector<1x256xi1> to vector<1x256xi32>
    %264 = arith.sitofp %263 : vector<1x256xi32> to vector<1x256xf32>
    %265 = vector.broadcast %260 : vector<1x256xf32> to vector<2x256xf32>
    %266 = arith.mulf %227, %265 : vector<2x256xf32>
    %267 = arith.addf %233, %266 : vector<2x256xf32>
    %268 = vector.broadcast %264 : vector<1x256xf32> to vector<2x256xf32>
    %269 = arith.mulf %239, %268 : vector<2x256xf32>
    %270 = arith.addf %267, %269 : vector<2x256xf32>
    %271 = vector.shape_cast %270 : vector<2x256xf32> to vector<2x16x16xf32>
    %272 = tpu.transpose %271, [0, 2, 1] : vector<2x16x16xf32> -> vector<2x16x16xf32>
    %273 = vector.shape_cast %272 : vector<2x16x16xf32> to vector<2x256xf32>
    %c0_129 = arith.constant 0 : index
    %c0_130 = arith.constant 0 : index
    %274 = vector.load %arg4[%c0_129, %c0_130] : memref<2x256xf32, #tpu.memory_space<vmem>>, vector<2x256xf32>
    tpu.vector_store %arg4[%c0_129, %c0_130], %273 {strides = array<i32>} : memref<2x256xf32, #tpu.memory_space<vmem>>, vector<2x256xf32>,
    return
  }
  func.func @transform_0(%arg0: i32) -> (i32, i32) {
    %c0_i32 = arith.constant 0 : i32
    %c0_i32_0 = arith.constant 0 : i32
    return %arg0, %c0_i32 : i32, i32
  }
  func.func @transform_1(%arg0: i32) -> i32 {
    %c0_i32 = arith.constant 0 : i32
    %c0_i32_0 = arith.constant 0 : i32
    return %c0_i32 : i32
  }
  func.func @transform_2(%arg0: i32) -> i32 {
    %c0_i32 = arith.constant 0 : i32
    %c0_i32_0 = arith.constant 0 : i32
    return %c0_i32 : i32
  }
  func.func @transform_3(%arg0: i32) -> (i32, i32) {
    %c0_i32 = arith.constant 0 : i32
    %c0_i32_0 = arith.constant 0 : i32
    return %arg0, %c0_i32 : i32, i32
  }
}

</mosaic_0001>

<bundles_post_ra>
// kernel: tpu_custom_call.1
= control target key start
LH: loop header
LB: loop body
LE: loop exit
PB: predicated region body
PF: predicated region fallthrough
CT: control target
= control target key end

     0   :  { %9 = vsyncpa [#allocation5], 0  ;;  %s1461_s0 = inlined_call_operand.hbm [shape: f32[2,1024], index: 0, kind: input, shape index: {}]   ;;  %s1462_s1 = inlined_call_operand.vmem [shape: f32[36], index: 1, kind: input, shape index: {}]   ;;  %s1463_s2 = inlined_call_operand.<no memory space> [shape: f32[1], index: 2, kind: input, shape index: {}]   ;;  %s1464_s3 = inlined_call_operand.hbm [shape: f32[2,256], index: 3, kind: output, shape index: {}]  }
   0x1   :  { %10 = vsyncpa [#allocation7], 0 }
   0x2   :  { %11 = vsyncpa [#allocation6], 0  ;;  %s28_s14 = sshll.u32 %s1462_s1, 4  ;;  %s1141_s15 = smov [#allocation4]   ;;  %s29_s14 = int_to_ptr.vmem [resolvable:$true] %s28_s14 }
   0x3   :  { %s18_s16 = sshll.u32 %s1141_s15, 4  ;;  %s1079_s19 = scalar_lea.hbm %s1461_s0, 256  ;;  %s19_s16 = int_to_ptr.vmem [resolvable:$true] %s18_s16 }
   0x4   :  { %p1080_p0 = scmp.ne.s32.totalorder %s1461_s0, %s1079_s19  ;;  %p1083_p1 = scmp.lt.u32.totalorder %s1079_s19, %s1461_s0 }
   0x6   :  { %p1085_p2 = pnand %p1083_p1, %p1080_p0 }
   0x8   :  { %1088 = shalt.err (!%p1085_p2)
}
   0x9   :  { %s1089_s24 = scalar_lea.vmem %s19_s16, 256  ;;  %p1094_p4 = scmp.lt.s32.totalorder %s19_s16, %s19_s16 }
   0xa   :  { %p1090_p3 = scmp.ne.s32.totalorder %s19_s16, %s1089_s24  ;;  %p1095_p5 = scmp.lt.s32.totalorder %s1089_s24, %s1089_s24 }
   0xc   :  { %p1096_p6 = por %p1095_p5, %p1094_p4 }
   0xe   :  { %p1097_p7 = pnand %p1096_p6, %p1090_p3 }
  0x10   :  { %1100 = shalt.err (!%p1097_p7)
}
  0x11   :  { %21 = dma.hbm_to_vmem [thread:$0]  %s1461_s0, 256, %s19_s16, [#allocation5]  }
  0x12   :  { %s1101_s26 = scalar_lea.vmem %s29_s14, 16  ;;  %p1106_p9 = scmp.lt.s32.totalorder %s29_s14, %s29_s14 }
  0x13   :  { %p1102_p8 = scmp.ne.s32.totalorder %s29_s14, %s1101_s26  ;;  %p1107_p10 = scmp.lt.s32.totalorder %s1101_s26, %s1101_s26 }
  0x15   :  { %p1108_p11 = por %p1107_p10, %p1106_p9 }
  0x17   :  { %p1109_p12 = pnand %p1108_p11, %p1102_p8 }
  0x19   :  { %1112 = shalt.err (!%p1109_p12)
}
  0x1a   :  { %s1142_s27 = smov [#allocation8]  }
  0x1b   :  { %31 = dma.vmem_to_smem %s29_s14, 16, %s1142_s27, [#allocation7]  }
  0x1c   :  { %1135 = dma.done.wait [#allocation5], 256  }
  0x1d   :  { %1136 = vsyncadd [#allocation5], 4294967040 }
  0x1e   :  { %1137 = dma.done.wait [#allocation7], 16  }
  0x1f   :  { %1138 = vsyncadd [#allocation7], 4294967280 }
  0x20   :  { %40 = sfence }
  0x21   :  { %v49_v0 = vld [vmem:[#allocation4] sm:$0xf]  ;;  %s1023_s28 = sld [smem:[#allocation8 + $0x6]]  ;;  %v1143_v1 = vmov 0.0   ;;  %s1020_s0 = sld [smem:[#allocation8 + $0x3]]  ;;  %v364_v19 = vlaneseq  ;;  %vm82_vm4 = vcmask 916480  }
  0x22   :  { %45 = vst [vmem:[#allocation2 + $0x6] sm:$0x3] %v1143_v1  ;;  %50 = vst [vmem:[#allocation2 + $0x2] sm:$0xf] %v49_v0  ;;  %v51_v2 = vld [vmem:[#allocation4 + $0x4] sm:$0xf] }
  0x23   :  { %41 = vst [vmem:[#allocation2] sm:$0x3] %v1143_v1  ;;  %42 = vst [vmem:[#allocation2 + $0x8] sm:$0x3] %v1143_v1  ;;  %s1025_s29 = sld [smem:[#allocation8 + $0x8]]  ;;  %s1022_s30 = sld [smem:[#allocation8 + $0x5]] }
  0x24   :  { %43 = vst [vmem:[#allocation2 + $0x10] sm:$0x3] %v1143_v1  ;;  %44 = vst [vmem:[#allocation2 + $0x18] sm:$0x3] %v1143_v1  ;;  %v54_v3 = vld [vmem:[#allocation4 + $0x8] sm:$0xf] }
  0x25   :  { %46 = vst [vmem:[#allocation2 + $0xe] sm:$0x3] %v1143_v1  ;;  %47 = vst [vmem:[#allocation2 + $0x16] sm:$0x3] %v1143_v1  ;;  %v57_v4 = vld [vmem:[#allocation4 + $0xc] sm:$0xf] }
  0x26   :  { %48 = vst [vmem:[#allocation2 + $0x1e] sm:$0x3] %v1143_v1  ;;  %53 = vst [vmem:[#allocation2 + $0xa] sm:$0xf] %v51_v2  ;;  %s1031_s4 = sld [smem:[#allocation8 + $0xe]]  ;;  %s1029_s5 = sld [smem:[#allocation8 + $0xc]] }
  0x27   :  { %56 = vst [vmem:[#allocation2 + $0x12] sm:$0xf] %v54_v3  ;;  %59 = vst [vmem:[#allocation2 + $0x1a] sm:$0xf] %v57_v4  ;;  %v109_v5 = vstv %s1023_s28  ;;  %v76_v6 = vstv %s1020_s0  ;;  %s1201_s6 = sld [smem:[#allocation8 + $0x11]]  ;;  %s1032_s7 = sld [smem:[#allocation8 + $0xf]] }
  0x28   :  { %s1144_s8 = smov 96   ;;  %s1145_s9 = smov 112   ;;  %v365_v24 = vand.u32 127, %v364_v19  ;;  %v1146_v38 = vmov 1983009808   ;;  %v1252_v47 = vshrl.u32 %v364_v19, 7 }
  0x29   :  { %v1203_v7 = vld [vmem:[#allocation2 + $0x2] sm:$0x3f]  ;;  %v130_v9 = vstv %s1025_s29  ;;  %v99_v10 = vstv %s1022_s30  ;;  %s1040_s10 = sld [smem:[#allocation8 + $0x17]]  ;;  %s1038_s11 = sld [smem:[#allocation8 + $0x15]]  ;;  %v407_v39 = vunpack.c.l.s4 %v1146_v38  ;;  %vm115_vm5 = vcmask 785408  }
  0x2a   :  { %v1205_v8 = vld [vmem:[#allocation2] sm:$0x3f]  ;;  %v110_v11 = vmul.f32 %v109_v5, %v1203_v7  ;;  %v131_v13 = vmul.f32 %v130_v9, %v1203_v7  ;;  %v100_v14 = vmul.f32 %v99_v10, %v1203_v7  ;;  %s1043_s12 = sld [smem:[#allocation8 + $0x1a]]  ;;  %s1041_s13 = sld [smem:[#allocation8 + $0x18]]  ;;  %v366_v31 = vadd.s32 128, %v365_v24 }
  0x2b   :  { %v77_v12 = vmul.f32 %v76_v6, %v1205_v8  ;;  %s1226_s14 = sld [smem:[#allocation8 + $0x20]]  ;;  %s1232_s15 = sld [smem:[#allocation8 + $0x1e]]  ;;  %v371_v36 = vand.u32 15, %v365_v24  ;;  %v408_v46 = vunpack.c.0.s8 %v407_v39  ;;  %v86_v63 = vld [vmem:[#allocation2 + $0x2] sm:$0xf]  ;;  %vm441_vm6 = vcmask 924672  }
  0x2c   :  { %112 = vrot.lane.b32.xlu1 %v110_v11, %s1144_s8  ;;  %v175_v16 = vstv %s1031_s4  ;;  %v153_v18 = vstv %s1029_s5  ;;  %s1238_s16 = sld [smem:[#allocation8 + $0x23]]  ;;  %s1240_s17 = sld [smem:[#allocation8 + $0x21]]  ;;  %v378_v37 = vand.u32 15, %v366_v31  ;;  %vm416_vm7 = vcmask 908288  }
  0x2d   :  { %79 = vrot.lane.b32.xlu0 %v77_v12, %s1145_s9  ;;  %v1213_v15 = vld [vmem:[#allocation2 + $0xa] sm:$0x3f]  ;;  %v205_v22 = vstv %s1201_s6  ;;  %v185_v23 = vstv %s1032_s7  ;;  %vm397_vm0 = vcmp.ne.s32.totalorder %v371_v36, 15  ;;  %vm391_vm2 = vcmp.ne.s32.totalorder %v371_v36, 0  ;;  %s1021_s18 = sld [smem:[#allocation8 + $0x4]]  ;;  %s1024_s19 = sld [smem:[#allocation8 + $0x7]] }
  0x2e   :  { %v1215_v17 = vld [vmem:[#allocation2 + $0x8] sm:$0x3f]  ;;  %v176_v20 = vmul.f32 %v175_v16, %v1213_v15  ;;  %v206_v25 = vmul.f32 %v205_v22, %v1213_v15  ;;  %v186_v26 = vmul.f32 %v185_v23, %v1213_v15  ;;  %v1228_v27 = vld [vmem:[#allocation2 + $0x12] sm:$0x3f]  ;;  %v1246_v42 = vld [vmem:[#allocation2 + $0x1a] sm:$0x3f]  ;;  %v1269_v58 = vsub.s32 %v408_v46, %v1252_v47 }
  0x2f   :  { %v154_v21 = vmul.f32 %v153_v18, %v1215_v17  ;;  %v250_v28 = vstv %s1040_s10  ;;  %v1230_v29 = vld [vmem:[#allocation2 + $0x10] sm:$0x3f]  ;;  %v228_v30 = vstv %s1038_s11  ;;  %v1249_v44 = vld [vmem:[#allocation2 + $0x18] sm:$0x3f]  ;;  %vm398_vm1 = vcmp.ne.s32.totalorder %v378_v37, 15  ;;  %s1030_s20 = sld [smem:[#allocation8 + $0xd]] }
  0x30   :  { %133 = vrot.lane.b32.xlu1 %v131_v13, %s1144_s8  ;;  %v251_v32 = vmul.f32 %v250_v28, %v1228_v27  ;;  %v229_v33 = vmul.f32 %v228_v30, %v1230_v29  ;;  %v280_v34 = vstv %s1043_s12  ;;  %v260_v35 = vstv %s1041_s13  ;;  %s1033_s21 = sld [smem:[#allocation8 + $0x10]]  ;;  %s1039_s22 = sld [smem:[#allocation8 + $0x16]]  ;;  %v162_v5 = vld [vmem:[#allocation2 + $0xa] sm:$0xf]  ;;  %v237_v12 = vld [vmem:[#allocation2 + $0x12] sm:$0xf] }
  0x31   :  { %102 = vrot.lane.b32.xlu0 %v100_v14, %s1145_s9  ;;  %v281_v40 = vmul.f32 %v280_v34, %v1228_v27  ;;  %v261_v41 = vmul.f32 %v260_v35, %v1228_v27  ;;  %v325_v43 = vstv %s1226_s14  ;;  %v303_v45 = vstv %s1232_s15  ;;  %s1042_s23 = sld [smem:[#allocation8 + $0x19]]  ;;  %s1147_s24 = smov 113   ;;  %v312_v18 = vld [vmem:[#allocation2 + $0x1a] sm:$0xf] }
  0x32   :  { %vm392_vm3 = vcmp.ne.s32.totalorder %v378_v37, 0  ;;  %v326_v48 = vmul.f32 %v325_v43, %v1246_v42  ;;  %v304_v49 = vmul.f32 %v303_v45, %v1249_v44  ;;  %v355_v50 = vstv %s1238_s16  ;;  %s1148_s1 = smov 111   ;;  %s1048_s25 = sld [smem:[#allocation8 + $0x1f]] }
  0x33   :  { %v335_v51 = vstv %s1240_s17  ;;  %v1055_v52 = vsel %vm397_vm0, 1.0, %v1143_v1  ;;  %v1056_v53 = vsel %vm398_vm1, 1.0, %v1143_v1  ;;  %v1053_v54 = vsel %vm391_vm2, 1.0, %v1143_v1  ;;  %s1051_s26 = sld [smem:[#allocation8 + $0x22]]  ;;  %s63_s27 = sld [smem:[#allocation8]] }
  0x34   :  { %178 = vrot.lane.b32.xlu1 %v176_v20, %s1145_s9  ;;  %v1054_v55 = vsel %vm392_vm3, 1.0, %v1143_v1  ;;  %v356_v56 = vmul.f32 %v355_v50, %v1246_v42  ;;  %v336_v57 = vmul.f32 %v335_v51, %v1246_v42  ;;  %v430_v59 = vcombine.low %v1055_v52, %v1056_v53  ;;  %s1019_s28 = sld [smem:[#allocation8 + $0x2]]  ;;  %s1026_s0 = sld [smem:[#allocation8 + $0x9]] }
  0x35   :  { %156 = vrot.lane.b32.xlu0 %v154_v21, %s1145_s9  ;;  %v405_v60 = vcombine.low %v1053_v54, %v1054_v55  ;;  %v88_v0 = vstv %s1021_s18  ;;  %v120_v2 = vstv %s1024_s19  ;;  %v164_v6 = vstv %s1030_s20  ;;  %s1028_s29 = sld [smem:[#allocation8 + $0xb]]  ;;  %s1289_s30 = sld [smem:[#allocation8 + $0x14]] }
  0x36   :  { %v437_v61 = vrot.slane %v430_v59, %v1269_v58  ;;  %v89_v3 = vmul.f32 %v88_v0, %v86_v63  ;;  %v121_v4 = vmul.f32 %v120_v2, %v1203_v7  ;;  %v195_v9 = vstv %s1033_s21  ;;  %s1291_s4 = sld [smem:[#allocation8 + $0x12]]  ;;  %s1302_s5 = sld [smem:[#allocation8 + $0x1d]] }
  0x37   :  { %v412_v62 = vrot.slane %v405_v60, %v1269_v58  ;;  %v165_v10 = vmul.f32 %v164_v6, %v162_v5  ;;  %v196_v11 = vmul.f32 %v195_v9, %v1213_v15  ;;  %v239_v13 = vstv %s1039_s22  ;;  %s1304_s6 = sld [smem:[#allocation8 + $0x1b]]  ;;  %s1315_s7 = sld [smem:[#allocation8 + $0x1]] }
  0x38   :  { %208 = vrot.lane.b32.xlu1 %v206_v25, %s1144_s8  ;;  %v270_v14 = vstv %s1042_s23  ;;  %v240_v7 = vmul.f32 %v239_v13, %v237_v12  ;;  %v314_v19 = vstv %s1048_s25  ;;  %s1324_s10 = sld [smem:[#allocation8 + $0xa]]  ;;  %s1332_s13 = sld [smem:[#allocation8 + $0x13]]  ;;  %vm424_vm8 = vcmask 7168  }
  0x39   :  { %188 = vrot.lane.b32.xlu0 %v186_v26, %s1144_s8  ;;  %v271_v16 = vmul.f32 %v270_v14, %v1228_v27  ;;  %v345_v20 = vstv %s1051_s26  ;;  %v315_v21 = vmul.f32 %v314_v19, %v312_v18  ;;  %v64_v22 = vstv %s63_s27  ;;  %s1149_s14 = smov 127   ;;  %s1150_s15 = smov 1  }
  0x3a   :  { %v346_v15 = vmul.f32 %v345_v20, %v1246_v42  ;;  %v65_v25 = vmul.f32 %v64_v22, %v1205_v8  ;;  %v72_v28 = vstv %s1019_s28  ;;  %v141_v30 = vstv %s1026_s0  ;;  %s1151_s16 = smov 64   ;;  %s1152_s17 = smov 80  }
  0x3b   :  { %v73_v35 = vmul.f32 %v72_v28, %v1205_v8  ;;  %v142_v36 = vmul.f32 %v141_v30, %v1215_v17  ;;  %v224_v55 = vstv %s1289_s30  ;;  %vm449_vm9 = vcmask 1039360   ;;  %s1153_s18 = smov 32   ;;  %s1154_s19 = smov 48  }
  0x3c   :  { %253 = vrot.lane.b32.xlu1 %v251_v32, %s1145_s9  ;;  %v299_v20 = vstv %s1302_s5  ;;  %s1155_s20 = smov 16   ;;  %vm971_vm10 = vcmask 130048   ;;  %vm973_vm11 = vcmask 261120   ;;  %vm975_vm12 = vcmask 392192  }
  0x3d   :  { %231 = vrot.lane.b32.xlu0 %v229_v33, %s1145_s9  ;;  %vm977_vm13 = vcmask 523264   ;;  %vm979_vm14 = vcmask 654336  }
  0x40   :  { %283 = vrot.lane.b32.xlu1 %v281_v40, %s1144_s8  ;;  %v149_v40 = vstv %s1028_s29 }
  0x41   :  { %263 = vrot.lane.b32.xlu0 %v261_v41, %s1144_s8  ;;  %v150_v46 = vmul.f32 %v149_v40, %v1215_v17 }
  0x44   :  { %328 = vrot.lane.b32.xlu1 %v326_v48, %s1145_s9 }
  0x45   :  { %306 = vrot.lane.b32.xlu0 %v304_v49, %s1145_s9 }
  0x48   :  { %358 = vrot.lane.b32.xlu1 %v356_v56, %s1144_s8  ;;  %v216_v56 = vstv %s1291_s4 }
  0x49   :  { %338 = vrot.lane.b32.xlu0 %v336_v57, %s1144_s8 }
  0x4c   :  { %438 = vrot.lane.b32.xlu1 %v437_v61, %s1147_s24 }
  0x4d   :  { %413 = vrot.lane.b32.xlu0 %v412_v62, %s1148_s1 }
  0x50   :  { %123 = vrot.lane.b32.xlu1 %v121_v4, %s1144_s8  ;;  %v217_v4 = vmul.f32 %v216_v56, %v1230_v29 }
  0x51   :  { %91 = vrot.lane.b32.xlu0 %v89_v3, %s1145_s9  ;;  %v225_v3 = vmul.f32 %v224_v55, %v1230_v29 }
  0x54   :  { %198 = vrot.lane.b32.xlu1 %v196_v11, %s1144_s8 }
  0x55   :  { %167 = vrot.lane.b32.xlu0 %v165_v10, %s1145_s9 }
  0x58   :  { %273 = vrot.lane.b32.xlu1 %v271_v16, %s1144_s8 }
  0x59   :  { %242 = vrot.lane.b32.xlu0 %v240_v7, %s1145_s9 }
  0x5c   :  { %348 = vrot.lane.b32.xlu1 %v346_v15, %s1144_s8 }
  0x5d   :  { %317 = vrot.lane.b32.xlu0 %v315_v21, %s1145_s9  ;;  %v291_v21 = vstv %s1304_s6 }
  0x5e   :  { %v292_v28 = vmul.f32 %v291_v21, %v1249_v44  ;;  %v220_v21 = vstv %s1332_s13 }
  0x9e   :  { %v113_v23 = vpop.permute.xlu1 %112 }
  0x9f   :  { %v80_v24 = vpop.permute.xlu0 %79  ;;  %v114_v26 = vrot.slane %v113_v23, 6 }
  0xa0   :  { %v81_v27 = vrot.slane %v80_v24, 2 }
  0xa1   :  { %v116_v37 = vsel %vm115_vm5, %v114_v26, %v113_v23 }
  0xa2   :  { %v83_v31 = vsel %vm82_vm4, %v80_v24, %v81_v27  ;;  %v134_v33 = vpop.permute.xlu1 %133  ;;  %v300_v27 = vmul.f32 %v299_v20, %v1249_v44 }
  0xa3   :  { %v85_v32 = vadd.f32 %v83_v31, %v65_v25  ;;  %v103_v34 = vpop.permute.xlu0 %102  ;;  %v135_v38 = vrot.slane %v134_v33, 6 }
  0xa4   :  { %v104_v39 = vrot.slane %v103_v34, 6 }
  0xa5   :  { %v118_v41 = vadd.f32 %v116_v37, %v85_v32  ;;  %v136_v50 = vsel %vm115_vm5, %v135_v38, %v134_v33 }
  0xa6   :  { %v105_v42 = vsel %vm82_vm4, %v104_v39, %v103_v34  ;;  %v179_v45 = vpop.permute.xlu1 %178 }
  0xa7   :  { %v107_v43 = vadd.f32 %v105_v42, %v73_v35  ;;  %v157_v48 = vpop.permute.xlu0 %156  ;;  %v143_v49 = vadd.f32 %v142_v36, %v118_v41  ;;  %v180_v51 = vrot.slane %v179_v45, 6  ;;  %v68_v42 = vstv %s1315_s7 }
  0xa8   :  { %v158_v52 = vrot.slane %v157_v48, 2  ;;  %v69_v55 = vmul.f32 %v68_v42, %v1205_v8 }
  0xa9   :  { %v138_v53 = vadd.f32 %v136_v50, %v107_v43  ;;  %v181_v61 = vsel %vm82_vm4, %v180_v51, %v179_v45 }
  0xaa   :  { %v159_v54 = vsel %vm82_vm4, %v157_v48, %v158_v52  ;;  %v209_v59 = vpop.permute.xlu1 %208 }
  0xab   :  { %v151_v57 = vadd.f32 %v150_v46, %v138_v53  ;;  %v189_v60 = vpop.permute.xlu0 %188  ;;  %v210_v62 = vrot.slane %v209_v59, 6  ;;  %v161_v2 = vadd.f32 %v159_v54, %v143_v49 }
  0xac   :  { %v190_v63 = vrot.slane %v189_v60, 6 }
  0xad   :  { %v183_v0 = vadd.f32 %v181_v61, %v151_v57  ;;  %v211_v5 = vsel %vm115_vm5, %v210_v62, %v209_v59  ;;  %v61_v59 = vstv %s1463_s2  ;;  %s1045_s2 = sld [smem:[#allocation8 + $0x1c]] }
  0xae   :  { %v191_v6 = vsel %vm115_vm5, %v190_v63, %v189_v60  ;;  %v254_v11 = vpop.permute.xlu1 %253 }
  0xaf   :  { %v213_v9 = vadd.f32 %v211_v5, %v183_v0  ;;  %v193_v10 = vadd.f32 %v191_v6, %v161_v2  ;;  %v232_v12 = vpop.permute.xlu0 %231  ;;  %v255_v13 = vrot.slane %v254_v11, 6 }
  0xb0   :  { %v233_v14 = vrot.slane %v232_v12, 2 }
  0xb1   :  { %v226_v7 = vadd.f32 %v225_v3, %v213_v9  ;;  %v218_v16 = vadd.f32 %v217_v4, %v193_v10  ;;  %v256_v18 = vsel %vm82_vm4, %v255_v13, %v254_v11  ;;  %v70_v4 = vadd.f32 %v69_v55, %v61_v59 }
  0xb2   :  { %v234_v19 = vsel %vm82_vm4, %v232_v12, %v233_v14  ;;  %v284_v15 = vpop.permute.xlu1 %283  ;;  %v145_v9 = vstv %s1324_s10 }
  0xb3   :  { %v264_v22 = vpop.permute.xlu0 %263  ;;  %v285_v23 = vrot.slane %v284_v15, 6  ;;  %v258_v25 = vadd.f32 %v256_v18, %v226_v7  ;;  %v236_v26 = vadd.f32 %v234_v19, %v218_v16  ;;  %v146_v13 = vmul.f32 %v145_v9, %v1215_v17 }
  0xb4   :  { %v265_v24 = vrot.slane %v264_v22, 6 }
  0xb5   :  { %v286_v30 = vsel %vm115_vm5, %v285_v23, %v284_v15 }
  0xb6   :  { %v266_v31 = vsel %vm115_vm5, %v265_v24, %v264_v22  ;;  %v288_v32 = vadd.f32 %v286_v30, %v258_v25  ;;  %v329_v34 = vpop.permute.xlu1 %328 }
  0xb7   :  { %v268_v33 = vadd.f32 %v266_v31, %v236_v26  ;;  %v307_v35 = vpop.permute.xlu0 %306  ;;  %v330_v36 = vrot.slane %v329_v34, 6  ;;  %v295_v31 = vstv %s1045_s2 }
  0xb8   :  { %v308_v37 = vrot.slane %v307_v35, 2  ;;  %v301_v38 = vadd.f32 %v300_v27, %v288_v32  ;;  %v221_v27 = vmul.f32 %v220_v21, %v1230_v29 }
  0xb9   :  { %v293_v39 = vadd.f32 %v292_v28, %v268_v33  ;;  %v331_v43 = vsel %vm82_vm4, %v330_v36, %v329_v34 }
  0xba   :  { %v359_v40 = vpop.permute.xlu1 %358  ;;  %v309_v45 = vsel %vm82_vm4, %v307_v35, %v308_v37  ;;  %v333_v51 = vadd.f32 %v331_v43, %v301_v38  ;;  %v296_v35 = vmul.f32 %v295_v31, %v1249_v44 }
  0xbb   :  { %v339_v41 = vpop.permute.xlu0 %338  ;;  %v360_v46 = vrot.slane %v359_v40, 6  ;;  %v311_v52 = vadd.f32 %v309_v45, %v293_v39 }
  0xbc   :  { %v340_v48 = vrot.slane %v339_v41, 6 }
  0xbd   :  { %v361_v49 = vsel %vm115_vm5, %v360_v46, %v359_v40 }
  0xbe   :  { %v341_v50 = vsel %vm115_vm5, %v340_v48, %v339_v41  ;;  %v439_v53 = vpop.permute.xlu1 %438  ;;  %v363_v60 = vadd.f32 %v361_v49, %v333_v51 }
  0xbf   :  { %v414_v54 = vpop.permute.xlu0 %413  ;;  %v440_v56 = vrot.slane %v439_v53, 6  ;;  %v343_v61 = vadd.f32 %v341_v50, %v311_v52 }
  0xc0   :  { %v415_v57 = vrot.slane %v414_v54, 6 }
  0xc1   :  { %v442_v62 = vsel %vm441_vm6, %v440_v56, %v439_v53 }
  0xc2   :  { %v417_v63 = vsel %vm416_vm7, %v415_v57, %v414_v54  ;;  %v444_v0 = vmul.f32 %v442_v62, %v363_v60  ;;  %v124_v5 = vpop.permute.xlu1 %123 }
  0xc3   :  { %v419_v2 = vmul.f32 %v417_v63, %v343_v61  ;;  %v92_v3 = vpop.permute.xlu0 %91  ;;  %v125_v8 = vrot.slane %v124_v5, 6 }
  0xc4   :  { %v93_v6 = vrot.slane %v92_v3, 6  ;;  %446 = vrot.lane.b32.xlu1 %v444_v0, %s1149_s14 }
  0xc5   :  { %421 = vrot.lane.b32.xlu0 %v419_v2, %s1150_s15  ;;  %v126_v11 = vsel %vm115_vm5, %v125_v8, %v124_v5 }
  0xc6   :  { %v94_v10 = vsel %vm82_vm4, %v93_v6, %v92_v3  ;;  %v199_v7 = vpop.permute.xlu1 %198 }
  0xc7   :  { %v96_v12 = vadd.f32 %v94_v10, %v70_v4  ;;  %v168_v14 = vpop.permute.xlu0 %167  ;;  %v200_v18 = vrot.slane %v199_v7, 6 }
  0xc8   :  { %v169_v16 = vrot.slane %v168_v14, 6 }
  0xc9   :  { %v128_v19 = vadd.f32 %v126_v11, %v96_v12  ;;  %v201_v24 = vsel %vm115_vm5, %v200_v18, %v199_v7 }
  0xca   :  { %v170_v20 = vsel %vm82_vm4, %v169_v16, %v168_v14  ;;  %v274_v23 = vpop.permute.xlu1 %273 }
  0xcb   :  { %v147_v15 = vadd.f32 %v146_v13, %v128_v19  ;;  %v243_v22 = vpop.permute.xlu0 %242  ;;  %v275_v28 = vrot.slane %v274_v23, 6 }
  0xcc   :  { %v244_v25 = vrot.slane %v243_v22, 6 }
  0xcd   :  { %v172_v26 = vadd.f32 %v170_v20, %v147_v15  ;;  %v276_v33 = vsel %vm115_vm5, %v275_v28, %v274_v23 }
  0xce   :  { %v245_v30 = vsel %vm82_vm4, %v244_v25, %v243_v22  ;;  %v349_v40 = vpop.permute.xlu1 %348 }
  0xcf   :  { %v203_v17 = vadd.f32 %v201_v24, %v172_v26  ;;  %v318_v38 = vpop.permute.xlu0 %317  ;;  %v350_v42 = vrot.slane %v349_v40, 6 }
  0xd0   :  { %v319_v39 = vrot.slane %v318_v38, 6 }
  0xd1   :  { %v222_v32 = vadd.f32 %v221_v27, %v203_v17  ;;  %v351_v43 = vsel %vm115_vm5, %v350_v42, %v349_v40 }
  0xd2   :  { %v320_v41 = vsel %vm82_vm4, %v319_v39, %v318_v38 }
  0xd3   :  { %v247_v34 = vadd.f32 %v245_v30, %v222_v32  ;;  %v1156_v32 = vmov 1934713408  }
  0xd5   :  { %v278_v36 = vadd.f32 %v276_v33, %v247_v34  ;;  %v561_v33 = vunpack.c.l.s4 %v1156_v32 }
  0xd7   :  { %v297_v37 = vadd.f32 %v296_v35, %v278_v36  ;;  %v562_v36 = vunpack.c.0.s8 %v561_v33 }
  0xd9   :  { %v322_v29 = vadd.f32 %v320_v41, %v297_v37  ;;  %v1385_v40 = vsub.s32 %v562_v36, %v1252_v47 }
  0xdb   :  { %v353_v50 = vadd.f32 %v351_v43, %v322_v29 }
 0x136   :  { %v447_v45 = vpop.permute.xlu1 %446 }
 0x137   :  { %v422_v46 = vpop.permute.xlu0 %421  ;;  %v448_v48 = vrot.slane %v447_v45, 2 }
 0x138   :  { %v423_v49 = vrot.slane %v422_v46, 6 }
 0x139   :  { %v450_v52 = vsel %vm449_vm9, %v447_v45, %v448_v48 }
 0x13a   :  { %v425_v51 = vsel %vm424_vm8, %v423_v49, %v422_v46 }
 0x13b   :  { %v427_v44 = vadd.f32 %v425_v51, %v353_v50 }
 0x13d   :  { %v452_v53 = vadd.f32 %v450_v52, %v427_v44 }
 0x13f   :  { %458 = vrot.lane.b32.xlu1 %v452_v53, %s1144_s8  ;;  %455 = vrot.lane.b32.xlu0 %v452_v53, %s1145_s9  ;;  %v454_v54 = vrot.slane %v452_v53, 2  ;;  %v476_v55 = vrot.slane %v452_v53, 4 }
 0x143   :  { %464 = vrot.lane.b32.xlu1 %v452_v53, %s1151_s16  ;;  %461 = vrot.lane.b32.xlu0 %v452_v53, %s1152_s17 }
 0x147   :  { %470 = vrot.lane.b32.xlu1 %v452_v53, %s1153_s18  ;;  %467 = vrot.lane.b32.xlu0 %v452_v53, %s1154_s19 }
 0x14b   :  { %473 = vrot.lane.b32.xlu0 %v452_v53, %s1155_s20  ;;  %483 = vrot.lane.b32.xlu1 %v454_v54, %s1145_s9 }
 0x14f   :  { %499 = vrot.lane.b32.xlu1 %v476_v55, %s1145_s9 }
 0x1b1   :  { %v459_v56 = vpop.permute.xlu1 %458  ;;  %v456_v57 = vpop.permute.xlu0 %455 }
 0x1b2   :  { %v460_v59 = vrot.slane %v459_v56, 2  ;;  %v457_v60 = vrot.slane %v456_v57, 2  ;;  %v478_v8 = vrot.slane %v459_v56, 4  ;;  %v477_v10 = vrot.slane %v456_v57, 4 }
 0x1b4   :  { %485 = vrot.lane.b32.xlu0 %v457_v60, %s1145_s9  ;;  %487 = vrot.lane.b32.xlu1 %v460_v59, %s1145_s9 }
 0x1b5   :  { %v465_v61 = vpop.permute.xlu1 %464  ;;  %v462_v62 = vpop.permute.xlu0 %461 }
 0x1b6   :  { %v466_v63 = vrot.slane %v465_v61, 2  ;;  %v463_v0 = vrot.slane %v462_v62, 2  ;;  %v480_v11 = vrot.slane %v465_v61, 4  ;;  %v479_v12 = vrot.slane %v462_v62, 4 }
 0x1b8   :  { %489 = vrot.lane.b32.xlu0 %v463_v0, %s1145_s9  ;;  %491 = vrot.lane.b32.xlu1 %v466_v63, %s1145_s9 }
 0x1b9   :  { %v471_v2 = vpop.permute.xlu1 %470  ;;  %v468_v3 = vpop.permute.xlu0 %467 }
 0x1ba   :  { %v472_v4 = vrot.slane %v471_v2, 2  ;;  %v469_v5 = vrot.slane %v468_v3, 2  ;;  %v482_v13 = vrot.slane %v471_v2, 4  ;;  %v481_v14 = vrot.slane %v468_v3, 4 }
 0x1bc   :  { %493 = vrot.lane.b32.xlu0 %v469_v5, %s1145_s9  ;;  %495 = vrot.lane.b32.xlu1 %v472_v4, %s1145_s9 }
 0x1bd   :  { %v474_v6 = vpop.permute.xlu0 %473  ;;  %v484_v7 = vpop.permute.xlu1 %483 }
 0x1be   :  { %v475_v9 = vrot.slane %v474_v6, 2 }
 0x1c0   :  { %497 = vrot.lane.b32.xlu0 %v475_v9, %s1145_s9  ;;  %503 = vrot.lane.b32.xlu1 %v478_v8, %s1145_s9 }
 0x1c1   :  { %v500_v16 = vpop.permute.xlu1 %499 }
 0x1c4   :  { %501 = vrot.lane.b32.xlu0 %v477_v10, %s1145_s9  ;;  %507 = vrot.lane.b32.xlu1 %v480_v11, %s1145_s9 }
 0x1c8   :  { %505 = vrot.lane.b32.xlu0 %v479_v12, %s1145_s9  ;;  %511 = vrot.lane.b32.xlu1 %v482_v13, %s1145_s9 }
 0x1cc   :  { %509 = vrot.lane.b32.xlu0 %v481_v14, %s1145_s9 }
 0x1d0   :  { %513 = vrot.lane.b32.xlu0 %v484_v7, %s1155_s20 }
 0x1d4   :  { %529 = vrot.lane.b32.xlu0 %v500_v16, %s1155_s20 }
 0x226   :  { %v486_v18 = vpop.permute.xlu0 %485  ;;  %v488_v19 = vpop.permute.xlu1 %487 }
 0x227   :  { %515 = vrot.lane.b32.xlu1 %v486_v18, %s1155_s20  ;;  %517 = vrot.lane.b32.xlu0 %v488_v19, %s1155_s20 }
 0x22a   :  { %v490_v20 = vpop.permute.xlu0 %489  ;;  %v492_v21 = vpop.permute.xlu1 %491 }
 0x22b   :  { %519 = vrot.lane.b32.xlu1 %v490_v20, %s1155_s20  ;;  %521 = vrot.lane.b32.xlu0 %v492_v21, %s1155_s20 }
 0x22e   :  { %v494_v15 = vpop.permute.xlu0 %493  ;;  %v496_v22 = vpop.permute.xlu1 %495 }
 0x22f   :  { %523 = vrot.lane.b32.xlu1 %v494_v15, %s1155_s20  ;;  %525 = vrot.lane.b32.xlu0 %v496_v22, %s1155_s20 }
 0x232   :  { %v498_v23 = vpop.permute.xlu0 %497  ;;  %v504_v24 = vpop.permute.xlu1 %503 }
 0x233   :  { %527 = vrot.lane.b32.xlu1 %v498_v23, %s1155_s20  ;;  %533 = vrot.lane.b32.xlu0 %v504_v24, %s1155_s20 }
 0x236   :  { %v502_v25 = vpop.permute.xlu0 %501  ;;  %v508_v26 = vpop.permute.xlu1 %507 }
 0x237   :  { %531 = vrot.lane.b32.xlu1 %v502_v25, %s1155_s20  ;;  %537 = vrot.lane.b32.xlu0 %v508_v26, %s1155_s20 }
 0x23a   :  { %v506_v27 = vpop.permute.xlu0 %505  ;;  %v512_v28 = vpop.permute.xlu1 %511 }
 0x23b   :  { %535 = vrot.lane.b32.xlu1 %v506_v27, %s1155_s20  ;;  %541 = vrot.lane.b32.xlu0 %v512_v28, %s1155_s20 }
 0x23e   :  { %v510_v17 = vpop.permute.xlu0 %509 }
 0x23f   :  { %539 = vrot.lane.b32.xlu1 %v510_v17, %s1155_s20 }
 0x242   :  { %v514_v30 = vpop.permute.xlu0 %513 }
 0x243   :  { %v559_v41 = vcombine.low %v474_v6, %v514_v30 }
 0x245   :  { %v566_v46 = vrot.slane %v559_v41, %v1385_v40 }
 0x246   :  { %v530_v31 = vpop.permute.xlu0 %529 }
 0x299   :  { %v518_v34 = vpop.permute.xlu0 %517  ;;  %v516_v35 = vpop.permute.xlu1 %515 }
 0x29a   :  { %v568_v37 = vcombine.low %v516_v35, %v518_v34 }
 0x29c   :  { %v575_v42 = vrot.slane %v568_v37, %v1385_v40 }
 0x29d   :  { %v522_v38 = vpop.permute.xlu0 %521  ;;  %v520_v39 = vpop.permute.xlu1 %519 }
 0x29e   :  { %v577_v29 = vcombine.low %v520_v39, %v522_v38  ;;  %v647_v49 = vcombine.low %v566_v46, %v575_v42  ;;  %v1057_v50 = vcombine.high %v566_v46, %v575_v42 }
 0x2a0   :  { %v584_v51 = vrot.slane %v577_v29, %v1385_v40  ;;  %v689_v55 = vrot.slane %v1057_v50, %v1269_v58  ;;  %v655_v57 = vrot.slane %v647_v49, %v1269_v58 }
 0x2a1   :  { %v526_v43 = vpop.permute.xlu0 %525  ;;  %v524_v45 = vpop.permute.xlu1 %523 }
 0x2a2   :  { %v586_v48 = vcombine.low %v524_v45, %v526_v43 }
 0x2a4   :  { %v593_v44 = vrot.slane %v586_v48, %v1385_v40 }
 0x2a5   :  { %v534_v52 = vpop.permute.xlu0 %533  ;;  %v528_v53 = vpop.permute.xlu1 %527 }
 0x2a6   :  { %v648_v54 = vcombine.low %v584_v51, %v593_v44  ;;  %v1058_v47 = vcombine.high %v584_v51, %v593_v44  ;;  %v595_v3 = vcombine.low %v528_v53, %v530_v31 }
 0x2a8   :  { %v696_v56 = vrot.slane %v1058_v47, %v1269_v58  ;;  %v662_v59 = vrot.slane %v648_v54, %v1269_v58  ;;  %v602_v9 = vrot.slane %v595_v3, %v1385_v40 }
 0x2a9   :  { %v532_v60 = vpop.permute.xlu1 %531  ;;  %v538_v63 = vpop.permute.xlu0 %537 }
 0x2aa   :  { %v697_v61 = vcombine.low %v689_v55, %v696_v56  ;;  %v663_v62 = vcombine.low %v655_v57, %v662_v59  ;;  %v604_v0 = vcombine.low %v532_v60, %v534_v52 }
 0x2ac   :  { %751 = vxpose.xlu0.b32.start [1/2] (short) (narrow) %v697_v61, 16  ;;  %719 = vxpose.xlu1.b32.start [1/2] (short) (narrow) %v663_v62, 16  ;;  %v611_v4 = vrot.slane %v604_v0, %v1385_v40 }
 0x2ad   :  { %v536_v2 = vpop.permute.xlu1 %535  ;;  %v542_v6 = vpop.permute.xlu0 %541 }
 0x2ae   :  { %v613_v5 = vcombine.low %v536_v2, %v538_v63  ;;  %v664_v11 = vcombine.low %v602_v9, %v611_v4  ;;  %v1059_v12 = vcombine.high %v602_v9, %v611_v4 }
 0x2b0   :  { %v620_v13 = vrot.slane %v613_v5, %v1385_v40  ;;  %v706_v18 = vrot.slane %v1059_v12, %v1269_v58  ;;  %v672_v20 = vrot.slane %v664_v11, %v1269_v58 }
 0x2b1   :  { %v540_v8 = vpop.permute.xlu1 %539 }
 0x2b2   :  { %v622_v10 = vcombine.low %v540_v8, %v542_v6 }
 0x2b4   :  { %v629_v14 = vrot.slane %v622_v10, %v1385_v40 }
 0x2b6   :  { %v665_v7 = vcombine.low %v620_v13, %v629_v14  ;;  %v1060_v16 = vcombine.high %v620_v13, %v629_v14 }
 0x2b8   :  { %v713_v19 = vrot.slane %v1060_v16, %v1269_v58  ;;  %v679_v21 = vrot.slane %v665_v7, %v1269_v58 }
 0x2ba   :  { %v714_v15 = vcombine.low %v706_v18, %v713_v19  ;;  %v680_v22 = vcombine.low %v672_v20, %v679_v21 }
 0x2bc   :  { %752 = vxpose.xlu0.b32.end [2/2] (short) (narrow) %v714_v15, 16  ;;  %720 = vxpose.xlu1.b32.end [2/2] (short) (narrow) %v680_v22, 16 }
 0x338   :  { %v767_v23 = vpop.trf.xlu0  ;;  %v735_v24 = vpop.trf.xlu1 }
 0x339   :  { %v798_v25 = vcombine.high %v767_v23, %v1143_v1  ;;  %v805_v26 = vrot.slane %v767_v23, %v1269_v58  ;;  %v790_v27 = vrot.slane %v735_v24, %v1269_v58  ;;  %v783_v28 = vcombine.high %v735_v24, %v1143_v1 }
 0x33b   :  { %v813_v17 = vcombine.low %v790_v27, %v805_v26  ;;  %v814_v30 = vcombine.high %v790_v27, %v805_v26  ;;  %v812_v33 = vrot.slane %v798_v25, %v1269_v58  ;;  %v797_v35 = vrot.slane %v783_v28, %v1269_v58 }
 0x33c   :  { %v768_v31 = vpop.trf.xlu0  ;;  %v736_v32 = vpop.trf.xlu1 }
 0x33d   :  { %v821_v34 = vrot.slane %v813_v17, %v1385_v40  ;;  %v871_v36 = vrot.slane %v768_v31, %v1269_v58  ;;  %v856_v37 = vrot.slane %v736_v32, %v1269_v58  ;;  %v828_v38 = vrot.slane %v814_v30, %v1385_v40 }
 0x33e   :  { %v864_v39 = vcombine.high %v768_v31, %v1143_v1  ;;  %v849_v41 = vcombine.high %v736_v32, %v1143_v1  ;;  %v829_v43 = vcombine.low %v797_v35, %v812_v33  ;;  %v830_v55 = vcombine.high %v797_v35, %v812_v33 }
 0x33f   :  { %v845_v42 = vcombine.high %v821_v34, %v1143_v1  ;;  %v880_v29 = vcombine.high %v856_v37, %v871_v36  ;;  %920 = vrot.lane.b32.xlu1 %v828_v38, %s1153_s18  ;;  %v846_v45 = vcombine.high %v828_v38, %v1143_v1  ;;  %v879_v50 = vcombine.low %v856_v37, %v871_v36 }
 0x340   :  { %v878_v48 = vrot.slane %v864_v39, %v1269_v58  ;;  %v863_v49 = vrot.slane %v849_v41, %v1269_v58  ;;  %v837_v51 = vrot.slane %v829_v43, %v1385_v40  ;;  %v844_v59 = vrot.slane %v830_v55, %v1385_v40 }
 0x341   :  { %916 = vrot.lane.b32.xlu0 %v845_v42, %s1155_s20  ;;  %v894_v46 = vrot.slane %v880_v29, %v1385_v40  ;;  %v887_v53 = vrot.slane %v879_v50, %v1385_v40 }
 0x342   :  { %v895_v44 = vcombine.low %v863_v49, %v878_v48  ;;  %v847_v54 = vcombine.high %v837_v51, %v1143_v1  ;;  %v896_v47 = vcombine.high %v863_v49, %v878_v48  ;;  %v848_v61 = vcombine.high %v844_v59, %v1143_v1 }
 0x343   :  { %924 = vrot.lane.b32.xlu1 %v846_v45, %s1154_s19  ;;  %v912_v52 = vcombine.high %v894_v46, %v1143_v1  ;;  %v911_v56 = vcombine.high %v887_v53, %v1143_v1 }
 0x344   :  { %v903_v58 = vrot.slane %v895_v44, %v1385_v40  ;;  %v910_v57 = vrot.slane %v896_v47, %v1385_v40 }
 0x345   :  { %948 = vrot.lane.b32.xlu0 %v894_v46, %s1153_s18 }
 0x346   :  { %v913_v60 = vcombine.high %v903_v58, %v1143_v1  ;;  %v914_v62 = vcombine.high %v910_v57, %v1143_v1 }
 0x347   :  { %928 = vrot.lane.b32.xlu1 %v837_v51, %s1151_s16 }
 0x349   :  { %952 = vrot.lane.b32.xlu0 %v912_v52, %s1154_s19 }
 0x34b   :  { %932 = vrot.lane.b32.xlu1 %v847_v54, %s1152_s17 }
 0x34d   :  { %956 = vrot.lane.b32.xlu0 %v903_v58, %s1151_s16 }
 0x34f   :  { %944 = vrot.lane.b32.xlu1 %v911_v56, %s1155_s20 }
 0x351   :  { %964 = vrot.lane.b32.xlu0 %v910_v57, %s1144_s8 }
 0x353   :  { %936 = vrot.lane.b32.xlu1 %v844_v59, %s1144_s8  ;;  %s1157_s8 = smov [#allocation9]  }
 0x355   :  { %960 = vrot.lane.b32.xlu0 %v913_v60, %s1152_s17 }
 0x357   :  { %940 = vrot.lane.b32.xlu1 %v848_v61, %s1145_s9 }
 0x359   :  { %968 = vrot.lane.b32.xlu0 %v914_v62, %s1145_s9  ;;  %s1008_s9 = sshll.u32 %s1157_s8, 4  ;;  %s1009_s9 = int_to_ptr.vmem [resolvable:$true] %s1008_s9 }
 0x35a   :  { %s1113_s21 = scalar_lea.vmem %s1009_s9, 64  ;;  %p1118_p0 = scmp.lt.s32.totalorder %s1009_s9, %s1009_s9 }
 0x35b   :  { %p1114_p13 = scmp.ne.s32.totalorder %s1009_s9, %s1113_s21  ;;  %p1119_p1 = scmp.lt.s32.totalorder %s1113_s21, %s1113_s21 }
 0x35d   :  { %p1120_p2 = por %p1119_p1, %p1118_p0 }
 0x35f   :  { %p1121_p3 = pnand %p1120_p2, %p1114_p13 }
 0x3b1   :  { %v921_v63 = vpop.permute.xlu1 %920 }
 0x3b3   :  { %v917_v0 = vpop.permute.xlu0 %916 }
 0x3b4   :  { %v972_v8 = vsel %vm971_vm10, %v821_v34, %v917_v0 }
 0x3b5   :  { %v925_v2 = vpop.permute.xlu1 %924  ;;  %v974_v12 = vsel %vm973_vm11, %v972_v8, %v921_v63 }
 0x3b6   :  { %v976_v18 = vsel %vm975_vm12, %v974_v12, %v925_v2 }
 0x3b7   :  { %v949_v3 = vpop.permute.xlu0 %948 }
 0x3b9   :  { %v929_v4 = vpop.permute.xlu1 %928 }
 0x3ba   :  { %v978_v20 = vsel %vm977_vm13, %v976_v18, %v929_v4 }
 0x3bb   :  { %v953_v40 = vpop.permute.xlu0 %952 }
 0x3bd   :  { %v933_v5 = vpop.permute.xlu1 %932 }
 0x3be   :  { %v980_v21 = vsel %vm979_vm14, %v978_v20, %v933_v5 }
 0x3bf   :  { %v957_v6 = vpop.permute.xlu0 %956 }
 0x3c1   :  { %v945_v9 = vpop.permute.xlu1 %944 }
 0x3c2   :  { %v983_v10 = vsel %vm971_vm10, %v887_v53, %v945_v9 }
 0x3c3   :  { %v965_v11 = vpop.permute.xlu0 %964  ;;  %v984_v1 = vsel %vm973_vm11, %v983_v10, %v949_v3 }
 0x3c4   :  { %v985_v13 = vsel %vm975_vm12, %v984_v1, %v953_v40 }
 0x3c5   :  { %v937_v14 = vpop.permute.xlu1 %936  ;;  %v986_v16 = vsel %vm977_vm13, %v985_v13, %v957_v6 }
 0x3c6   :  { %v981_v22 = vsel %vm115_vm5, %v980_v21, %v937_v14 }
 0x3c7   :  { %v961_v7 = vpop.permute.xlu0 %960 }
 0x3c8   :  { %v987_v19 = vsel %vm979_vm14, %v986_v16, %v961_v7 }
 0x3c9   :  { %v941_v15 = vpop.permute.xlu1 %940  ;;  %v988_v24 = vsel %vm115_vm5, %v987_v19, %v965_v11 }
 0x3ca   :  { %v982_v25 = vsel %vm82_vm4, %v981_v22, %v941_v15 }
 0x3cb   :  { %v969_v23 = vpop.permute.xlu0 %968 }
 0x3cc   :  { %v989_v26 = vsel %vm82_vm4, %v988_v24, %v969_v23 }
 0x3cd   :  { %v992_v27 = vcombine.low %v982_v25, %v989_v26 }
 0x3cf   :  { %1061 = vst.sshfl [vmem:[#allocation9] sm:$0x33 pattern:$0x76325410] %v992_v27 }
 0x3d0   :  { %1124 = shalt.err (!%p1121_p3)
}
 0x3d1   :  { %s1125_s24 = scalar_lea.hbm %s1464_s3, 64 }
 0x3d2   :  { %p1126_p4 = scmp.ne.s32.totalorder %s1464_s3, %s1125_s24  ;;  %p1129_p5 = scmp.lt.u32.totalorder %s1125_s24, %s1464_s3 }
 0x3d4   :  { %p1131_p6 = pnand %p1129_p5, %p1126_p4 }
 0x3d6   :  { %1134 = shalt.err (!%p1131_p6)
}
 0x3d7   :  { %1011 = dma.vmem_to_hbm [thread:$0]  %s1009_s9, 64, %s1464_s3, [#allocation6]  }
 0x3d8   :  { %1139 = dma.done.wait [#allocation6], 64  }
 0x3d9   :  { %1140 = vsyncadd [#allocation6], 4294967232 }
 0x3da   :  { %1015 = vsyncpa [#allocation5], 1 }
 0x3db   :  { %1016 = vsyncpa [#allocation6], 1 }
 0x3dc   :  { %1017 = vsyncpa [#allocation7], 1 }

</bundles_post_ra>
